<compile_context>
chip_gen: v6e
topology: v6e:2x2x1
jax: 0.10.0
libtpu: 0.0.40
codegen_flags: <defaults>
</compile_context>

<pallas_src>
import functools

import jax
import jax.numpy as jnp
from jax.experimental import pallas as pl
from jax.experimental.pallas import tpu as pltpu

_LANE = 128
_SUB = 16                 # bf16 sublane packing (also covers f32's 8)
_TM_MAX = 4096            # cap tile rows; keeps double-buffered VMEM tiny on all gens
_SINGLE_TILE_MAX = 512    # up to here: one grid step; above: even tile count (v7x)
_COMPUTE_DTYPE = jnp.bfloat16


def _round_up(x, m):
    return ((x + m - 1) // m) * m


def _choose_tiling(batch):
    """Return (tile_rows, padded_batch). Even #tiles for mid/large batches (v7x)."""
    if batch <= _SINGLE_TILE_MAX:
        tm = _round_up(max(batch, 1), _SUB)
        return tm, tm
    n = 2
    while -(-batch // n) > _TM_MAX:
        n += 2
    tm = _round_up(-(-batch // n), _SUB)
    return tm, n * tm


def _qnet_kernel(x_ref, w1_ref, b1_ref, w2_ref, b2_ref, w3_ref, b3_ref, o_ref):
    # x tile arrives as f32 and is cast to bf16 in-register (saves a separate
    # wrapper-side pass over x: 4 B/elem read instead of 8 B/elem read+write+read).
    x = x_ref[...].astype(w1_ref.dtype)
    # Layer 1: Linear + ReLU (bf16 MXU matmul, f32 accumulate, f32 elementwise).
    h1 = jnp.dot(x, w1_ref[...], preferred_element_type=jnp.float32)
    h1 = jnp.maximum(h1 + b1_ref[...], 0.0)
    # Layer 2: Linear + ReLU.
    h2 = jnp.dot(h1.astype(w2_ref.dtype), w2_ref[...],
                 preferred_element_type=jnp.float32)
    h2 = jnp.maximum(h2 + b2_ref[...], 0.0)
    # Layer 3: Linear (no activation).
    out = jnp.dot(h2.astype(w3_ref.dtype), w3_ref[...],
                  preferred_element_type=jnp.float32)
    # Lane-dense (128-wide) bf16 store: unmasked vst, half the f32 writeback bytes.
    o_ref[...] = (out + b3_ref[...]).astype(o_ref.dtype)


def prepare_params(params):
    """One-time hoist of per-call work: bf16 weight casts + layer-3 lane padding."""
    out_size = params["w3"].shape[1]
    out_pad = _round_up(out_size, _LANE)
    w3 = params["w3"]
    b3 = params["b3"]
    if out_pad != out_size:
        w3 = jnp.pad(w3, ((0, 0), (0, out_pad - out_size)))
        b3 = jnp.pad(b3, ((0, 0), (0, out_pad - out_size)))
    return {
        "w1": params["w1"].astype(_COMPUTE_DTYPE),
        "b1": params["b1"].astype(jnp.float32),
        "w2": params["w2"].astype(_COMPUTE_DTYPE),
        "b2": params["b2"].astype(jnp.float32),
        "w3": w3.astype(_COMPUTE_DTYPE),
        "b3": b3.astype(jnp.float32),
    }


@functools.partial(jax.jit, static_argnames=("out_size",))
def linear_qnet_forward(x, prepared, out_size):
    """x: (B, input_size) float32. prepared: output of prepare_params().

    Returns (B, out_size) float32, matching the PyTorch module's forward.
    """
    B, in_size = x.shape
    hidden = prepared["w1"].shape[1]
    hidden2 = prepared["w2"].shape[1]
    out_pad = prepared["w3"].shape[1]

    tm, padded_b = _choose_tiling(B)
    xp = x if padded_b == B else jnp.pad(x, ((0, padded_b - B), (0, 0)))
    grid = (padded_b // tm,)

    out_padded = pl.pallas_call(
        _qnet_kernel,
        out_shape=jax.ShapeDtypeStruct((padded_b, out_pad), _COMPUTE_DTYPE),
        grid_spec=pltpu.PrefetchScalarGridSpec(
            num_scalar_prefetch=0,
            grid=grid,
            in_specs=[
                pl.BlockSpec((tm, in_size), lambda i: (i, 0)),        # x tile (f32)
                pl.BlockSpec((in_size, hidden), lambda i: (0, 0)),    # w1 (resident)
                pl.BlockSpec((1, hidden), lambda i: (0, 0)),          # b1
                pl.BlockSpec((hidden, hidden2), lambda i: (0, 0)),    # w2
                pl.BlockSpec((1, hidden2), lambda i: (0, 0)),         # b2
                pl.BlockSpec((hidden2, out_pad), lambda i: (0, 0)),   # w3 (padded)
                pl.BlockSpec((1, out_pad), lambda i: (0, 0)),         # b3 (padded)
            ],
            out_specs=pl.BlockSpec((tm, out_pad), lambda i: (i, 0)),
        ),
        compiler_params=pltpu.CompilerParams(
            # Batch tiles shard across the two TensorCores on v7x (no-op v5e/v6e).
            dimension_semantics=("parallel",),
        ),
        cost_estimate=pl.CostEstimate(
            flops=2 * B * (in_size * hidden + hidden * hidden2 + hidden2 * out_size),
            transcendentals=0,
            bytes_accessed=(
                xp.size * 4
                + prepared["w1"].size * 2 + prepared["w2"].size * 2
                + prepared["w3"].size * 2
                + prepared["b1"].size * 4 + prepared["b2"].size * 4
                + prepared["b3"].size * 4
                + padded_b * out_pad * 2),
        ),
    )(xp, prepared["w1"], prepared["b1"], prepared["w2"], prepared["b2"],
      prepared["w3"], prepared["b3"])

    return out_padded[:B, :out_size].astype(jnp.float32)


def init_params(key, input_size, hidden_size, hidden_size_2, output_size):
    """PyTorch-style init: U(-1/sqrt(fan_in), 1/sqrt(fan_in)).
    Weights stored already transposed to (in, out) for the kernel."""
    def layer(k, fan_in, fan_out):
        kw, kb = jax.random.split(k)
        bound = 1.0 / jnp.sqrt(jnp.float32(fan_in))
        w = jax.random.uniform(kw, (fan_in, fan_out), jnp.float32, -bound, bound)
        b = jax.random.uniform(kb, (1, fan_out), jnp.float32, -bound, bound)
        return w, b

    k1, k2, k3 = jax.random.split(key, 3)
    w1, b1 = layer(k1, input_size, hidden_size)
    w2, b2 = layer(k2, hidden_size, hidden_size_2)
    w3, b3 = layer(k3, hidden_size_2, output_size)
    return {"w1": w1, "b1": b1, "w2": w2, "b2": b2, "w3": w3, "b3": b3}


def _reference_forward(x, p):
    h = jnp.maximum(x @ p["w1"] + p["b1"], 0.0)
    h = jnp.maximum(h @ p["w2"] + p["b2"], 0.0)
    return h @ p["w3"] + p["b3"]


# TODO(synk): Linear_QNet.save() is host-side torch checkpoint I/O — no kernel equivalent.

if __name__ == "__main__":
    input_size, hidden_size, hidden_size_2, output_size = 16, 32, 32, 8

    key = jax.random.PRNGKey(0)
    kx1, kx2, kp = jax.random.split(key, 3)
    params = init_params(kp, input_size, hidden_size, hidden_size_2, output_size)
    prepared = prepare_params(params)   # one-time cast/pad, hoisted out of forward

    # Small ragged batch: single grid step (30 -> 32-row tile).
    x_small = jax.random.normal(kx1, (30, input_size), jnp.float32)
    out_small = jax.block_until_ready(
        linear_qnet_forward(x_small, prepared, output_size))
    ref_small = _reference_forward(x_small, params)
    assert out_small.shape == (30, output_size)
    assert jnp.allclose(out_small, ref_small, atol=5e-2, rtol=5e-2), (
        float(jnp.max(jnp.abs(out_small - ref_small))))

    # Larger batch: exactly 2 equal tiles (600 -> 2 x 304 rows) so both v7x TCs run.
    x_big = jax.random.normal(kx2, (600, input_size), jnp.float32)
    out_big = jax.block_until_ready(
        linear_qnet_forward(x_big, prepared, output_size))
    ref_big = _reference_forward(x_big, params)
    assert out_big.shape == (600, output_size)
    assert jnp.allclose(out_big, ref_big, atol=5e-2, rtol=5e-2), (
        float(jnp.max(jnp.abs(out_big - ref_big))))

    print("KERNEL_OK")
</pallas_src>

<mosaic_0001>
module attributes {stable_mosaic.version = 11 : i64} {
  func.func @_qnet_kernel(%arg0: i32, %arg1: memref<32x16xf32, #tpu.memory_space<vmem>>, %arg2: memref<16x32xbf16, #tpu.memory_space<vmem>>, %arg3: memref<1x32xf32, #tpu.memory_space<vmem>>, %arg4: memref<32x32xbf16, #tpu.memory_space<vmem>>, %arg5: memref<1x32xf32, #tpu.memory_space<vmem>>, %arg6: memref<32x128xbf16, #tpu.memory_space<vmem>>, %arg7: memref<1x128xf32, #tpu.memory_space<vmem>>, %arg8: memref<32x128xbf16, #tpu.memory_space<vmem>>) attributes {dimension_semantics = [#tpu.dimension_semantics<parallel>], iteration_bounds = array<i64: 1>, scalar_prefetch = 0 : i64, scratch_operands = 0 : i64, tpu.core_type = #tpu.core_type<tc>, window_params = [{transform_indices = @transform_0, window_bounds = array<i64: 32, 16>}, {pipeline_mode = #tpu.pipeline_mode<synchronous>, transform_indices = @transform_1, window_bounds = array<i64: 16, 32>}, {pipeline_mode = #tpu.pipeline_mode<synchronous>, transform_indices = @transform_2, window_bounds = array<i64: 1, 32>}, {pipeline_mode = #tpu.pipeline_mode<synchronous>, transform_indices = @transform_3, window_bounds = array<i64: 32, 32>}, {pipeline_mode = #tpu.pipeline_mode<synchronous>, transform_indices = @transform_4, window_bounds = array<i64: 1, 32>}, {pipeline_mode = #tpu.pipeline_mode<synchronous>, transform_indices = @transform_5, window_bounds = array<i64: 32, 128>}, {pipeline_mode = #tpu.pipeline_mode<synchronous>, transform_indices = @transform_6, window_bounds = array<i64: 1, 128>}, {transform_indices = @transform_7, window_bounds = array<i64: 32, 128>}]} {
    %c0 = arith.constant 0 : index
    %c0_0 = arith.constant 0 : index
    %0 = vector.load %arg1[%c0, %c0_0] : memref<32x16xf32, #tpu.memory_space<vmem>>, vector<32x16xf32>
    %1 = arith.truncf %0 : vector<32x16xf32> to vector<32x16xbf16>
    %c0_1 = arith.constant 0 : index
    %c0_2 = arith.constant 0 : index
    %2 = vector.load %arg2[%c0_1, %c0_2] : memref<16x32xbf16, #tpu.memory_space<vmem>>, vector<16x32xbf16>
    %cst = arith.constant dense<0.000000e+00> : vector<32x32xf32>
    %3 = tpu.matmul %1, %2, %cst {dimension_numbers = #tpu.dot_dimension_numbers<[1], [0], [0], [1], [0, 0, 1, 1], [], []>} : vector<32x16xbf16>, vector<16x32xbf16>, vector<32x32xf32> -> vector<32x32xf32>
    %c0_3 = arith.constant 0 : index
    %c0_4 = arith.constant 0 : index
    %4 = vector.load %arg3[%c0_3, %c0_4] : memref<1x32xf32, #tpu.memory_space<vmem>>, vector<1x32xf32>
    %5 = vector.broadcast %4 : vector<1x32xf32> to vector<32x32xf32>
    %6 = arith.addf %3, %5 : vector<32x32xf32>
    %cst_5 = arith.constant 0.000000e+00 : f32
    %7 = vector.broadcast %cst_5 : f32 to vector<32x32xf32>
    %8 = arith.maximumf %6, %7 : vector<32x32xf32>
    %9 = arith.truncf %8 : vector<32x32xf32> to vector<32x32xbf16>
    %c0_6 = arith.constant 0 : index
    %c0_7 = arith.constant 0 : index
    %10 = vector.load %arg4[%c0_6, %c0_7] : memref<32x32xbf16, #tpu.memory_space<vmem>>, vector<32x32xbf16>
    %cst_8 = arith.constant dense<0.000000e+00> : vector<32x32xf32>
    %11 = tpu.matmul %9, %10, %cst_8 {dimension_numbers = #tpu.dot_dimension_numbers<[1], [0], [0], [1], [0, 0, 1, 1], [], []>} : vector<32x32xbf16>, vector<32x32xbf16>, vector<32x32xf32> -> vector<32x32xf32>
    %c0_9 = arith.constant 0 : index
    %c0_10 = arith.constant 0 : index
    %12 = vector.load %arg5[%c0_9, %c0_10] : memref<1x32xf32, #tpu.memory_space<vmem>>, vector<1x32xf32>
    %13 = vector.broadcast %12 : vector<1x32xf32> to vector<32x32xf32>
    %14 = arith.addf %11, %13 : vector<32x32xf32>
    %cst_11 = arith.constant 0.000000e+00 : f32
    %15 = vector.broadcast %cst_11 : f32 to vector<32x32xf32>
    %16 = arith.maximumf %14, %15 : vector<32x32xf32>
    %17 = arith.truncf %16 : vector<32x32xf32> to vector<32x32xbf16>
    %c0_12 = arith.constant 0 : index
    %c0_13 = arith.constant 0 : index
    %18 = vector.load %arg6[%c0_12, %c0_13] : memref<32x128xbf16, #tpu.memory_space<vmem>>, vector<32x128xbf16>
    %cst_14 = arith.constant dense<0.000000e+00> : vector<32x128xf32>
    %19 = tpu.matmul %17, %18, %cst_14 {dimension_numbers = #tpu.dot_dimension_numbers<[1], [0], [0], [1], [0, 0, 1, 1], [], []>} : vector<32x32xbf16>, vector<32x128xbf16>, vector<32x128xf32> -> vector<32x128xf32>
    %c0_15 = arith.constant 0 : index
    %c0_16 = arith.constant 0 : index
    %20 = vector.load %arg7[%c0_15, %c0_16] : memref<1x128xf32, #tpu.memory_space<vmem>>, vector<1x128xf32>
    %21 = vector.broadcast %20 : vector<1x128xf32> to vector<32x128xf32>
    %22 = arith.addf %19, %21 : vector<32x128xf32>
    %23 = arith.truncf %22 : vector<32x128xf32> to vector<32x128xbf16>
    %c0_17 = arith.constant 0 : index
    %c0_18 = arith.constant 0 : index
    %24 = vector.load %arg8[%c0_17, %c0_18] : memref<32x128xbf16, #tpu.memory_space<vmem>>, vector<32x128xbf16>
    tpu.vector_store %arg8[%c0_17, %c0_18], %23 {strides = array<i32>} : memref<32x128xbf16, #tpu.memory_space<vmem>>, vector<32x128xbf16>,
    return
  }
  func.func @transform_0(%arg0: i32) -> (i32, i32) {
    %c0_i32 = arith.constant 0 : i32
    %c0_i32_0 = arith.constant 0 : i32
    return %arg0, %c0_i32 : i32, i32
  }
  func.func @transform_1(%arg0: i32) -> (i32, i32) {
    %c0_i32 = arith.constant 0 : i32
    %c0_i32_0 = arith.constant 0 : i32
    %c0_i32_1 = arith.constant 0 : i32
    return %c0_i32, %c0_i32_0 : i32, i32
  }
  func.func @transform_2(%arg0: i32) -> (i32, i32) {
    %c0_i32 = arith.constant 0 : i32
    %c0_i32_0 = arith.constant 0 : i32
    %c0_i32_1 = arith.constant 0 : i32
    return %c0_i32, %c0_i32_0 : i32, i32
  }
  func.func @transform_3(%arg0: i32) -> (i32, i32) {
    %c0_i32 = arith.constant 0 : i32
    %c0_i32_0 = arith.constant 0 : i32
    %c0_i32_1 = arith.constant 0 : i32
    return %c0_i32, %c0_i32_0 : i32, i32
  }
  func.func @transform_4(%arg0: i32) -> (i32, i32) {
    %c0_i32 = arith.constant 0 : i32
    %c0_i32_0 = arith.constant 0 : i32
    %c0_i32_1 = arith.constant 0 : i32
    return %c0_i32, %c0_i32_0 : i32, i32
  }
  func.func @transform_5(%arg0: i32) -> (i32, i32) {
    %c0_i32 = arith.constant 0 : i32
    %c0_i32_0 = arith.constant 0 : i32
    %c0_i32_1 = arith.constant 0 : i32
    return %c0_i32, %c0_i32_0 : i32, i32
  }
  func.func @transform_6(%arg0: i32) -> (i32, i32) {
    %c0_i32 = arith.constant 0 : i32
    %c0_i32_0 = arith.constant 0 : i32
    %c0_i32_1 = arith.constant 0 : i32
    return %c0_i32, %c0_i32_0 : i32, i32
  }
  func.func @transform_7(%arg0: i32) -> (i32, i32) {
    %c0_i32 = arith.constant 0 : i32
    %c0_i32_0 = arith.constant 0 : i32
    return %arg0, %c0_i32 : i32, i32
  }
}

</mosaic_0001>

<bundles_post_ra>
// kernel: linear_qnet_forward.1
= control target key start
LH: loop header
LB: loop body
LE: loop exit
PB: predicated region body
PF: predicated region fallthrough
CT: control target
= control target key end

     0   :  { %vm48_vm0 = vcmask 130048   ;;  %vm133_vm1 = vcmask 261120   ;;  %s454_s1 = inlined_call_operand.vmem [shape: bf16[16,32], index: 1, kind: input, shape index: {}]   ;;  %s455_s0 = inlined_call_operand.vmem [shape: f32[32,16], index: 0, kind: input, shape index: {}]   ;;  %s456_s3 = inlined_call_operand.vmem [shape: bf16[32,32], index: 3, kind: input, shape index: {}]   ;;  %s457_s2 = inlined_call_operand.vmem [shape: f32[1,32], index: 2, kind: input, shape index: {}]   ;;  %s458_s5 = inlined_call_operand.vmem [shape: bf16[32,128], index: 5, kind: input, shape index: {}]   ;;  %s459_s4 = inlined_call_operand.vmem [shape: f32[1,32], index: 4, kind: input, shape index: {}]   ;;  %s460_s6 = inlined_call_operand.vmem [shape: f32[1,128], index: 6, kind: input, shape index: {}]   ;;  %s461_s7 = inlined_call_operand.vmem [shape: bf16[32,128], index: 7, kind: output, shape index: {}]  }
   0x1   :  { %v363_v0 = vld [vmem:[%s454_s1] sm:$0xff]   ;;  %v28_v2 = vld [vmem:[%s455_s0 + $0x8] sm:$0xff]  ;;  %v29_v3 = vld [vmem:[%s455_s0 + $0x10] sm:$0xff] }
   0x2   :  { %v27_v1 = vld [vmem:[%s455_s0] sm:$0xff]  ;;  %341 = vmatprep.subr.bf16.mxu0 %v363_v0  ;;  %v30_v5 = vld [vmem:[%s455_s0 + $0x18] sm:$0xff]  ;;  %v364_v7 = vld [vmem:[%s456_s3 + $0x8] sm:$0xff]  }
   0x3   :  { %v31_v4 = vpack.c.bf16 %v28_v2, %v27_v1  ;;  %342 = vmatpush3.bf16.msra.mxu0 %v363_v0  ;;  %v32_v6 = vpack.c.bf16 %v30_v5, %v29_v3  ;;  %347 = vmatprep.subr.bf16.mxu1 %v364_v7  ;;  %v365_v8 = vld [vmem:[%s456_s3] sm:$0xff]   ;;  %v366_v24 = vld [vmem:[%s458_s5 + $0x8] sm:$0xff]  }
   0x4   :  { %348 = vmatpush3.bf16.msra.mxu1 %v364_v7  ;;  %v297_v11 = vld [vmem:[%s457_s2] ss:$0 sm:$0xff]  ;;  %355 = vmatprep.subr.bf16.mxu0 %v366_v24 }
   0x5   :  { %343 = vmatprep.mubr.msk.bf16.mxu0 %vm48_vm0, %v31_v4  ;;  %349 = vmatprep.subr.bf16.mxu1 %v365_v8  ;;  %v367_v25 = vld [vmem:[%s458_s5] sm:$0xff]  }
   0x6   :  { %344 = vmatmul.mubr.msk.bf16.vlgmr.msra.gmra.mxu0 %vm48_vm0, %v32_v6  ;;  %v301_v28 = vld [vmem:[%s459_s4] ss:$0 sm:$0xff] }
   0x7   :  { %356 = vmatpush3.bf16.msra.mxu0 %v366_v24  ;;  %v306_v42 = vld [vmem:[%s460_s6] ss:$0 sm:$0xff] }
   0x8   :  { %350 = vmatpush3.bf16.msra.mxu1 %v365_v8  ;;  %357 = vmatprep.subr.bf16.mxu0 %v367_v25 }
   0xb   :  { %358 = vmatpush3.bf16.msra.mxu0 %v367_v25 }
  0xc6   :  { %v345_v9 = vpop.f32.mrf.mxu0 }
  0xc7   :  { %v98_v15 = vadd.f32 %v345_v9, %v297_v11 }
  0xc8   :  { %v89_v10 = vpop.f32.mrf.mxu0 }
  0xc9   :  { %v90_v13 = vadd.f32 %v297_v11, %v89_v10  ;;  %v106_v21 = vmax.f32 %v98_v15, 0.0 }
  0xca   :  { %v346_v12 = vpop.f32.mrf.mxu0 }
  0xcb   :  { %v101_v14 = vadd.f32 %v346_v12, %v297_v11  ;;  %v104_v19 = vmax.f32 %v90_v13, 0.0 }
  0xcc   :  { %v92_v16 = vpop.f32.mrf.mxu0 }
  0xcd   :  { %v93_v17 = vadd.f32 %v297_v11, %v92_v16  ;;  %v107_v18 = vmax.f32 %v101_v14, 0.0 }
  0xcf   :  { %v105_v20 = vmax.f32 %v93_v17, 0.0  ;;  %v109_v23 = vpack.c.bf16 %v107_v18, %v106_v21 }
  0xd1   :  { %v108_v22 = vpack.c.bf16 %v105_v20, %v104_v19 }
  0xd3   :  { %351 = vmatprep.mubr.msk.bf16.mxu1 %vm133_vm1, %v108_v22 }
  0xd4   :  { %352 = vmatmul.mubr.msk.bf16.vlgmr.msra.gmra.mxu1 %vm133_vm1, %v109_v23 }
 0x194   :  { %v353_v26 = vpop.f32.mrf.mxu1 }
 0x195   :  { %v183_v32 = vadd.f32 %v353_v26, %v301_v28 }
 0x196   :  { %v174_v27 = vpop.f32.mrf.mxu1 }
 0x197   :  { %v175_v30 = vadd.f32 %v301_v28, %v174_v27  ;;  %v191_v38 = vmax.f32 %v183_v32, 0.0 }
 0x198   :  { %v354_v29 = vpop.f32.mrf.mxu1 }
 0x199   :  { %v186_v31 = vadd.f32 %v354_v29, %v301_v28  ;;  %v189_v36 = vmax.f32 %v175_v30, 0.0 }
 0x19a   :  { %v177_v33 = vpop.f32.mrf.mxu1 }
 0x19b   :  { %v178_v34 = vadd.f32 %v301_v28, %v177_v33  ;;  %v192_v35 = vmax.f32 %v186_v31, 0.0 }
 0x19d   :  { %v190_v37 = vmax.f32 %v178_v34, 0.0  ;;  %v194_v40 = vpack.c.bf16 %v192_v35, %v191_v38 }
 0x19f   :  { %v193_v39 = vpack.c.bf16 %v190_v37, %v189_v36 }
 0x1a1   :  { %359 = vmatprep.mubr.msk.bf16.mxu0 %vm133_vm1, %v193_v39 }
 0x1a2   :  { %360 = vmatmul.mubr.msk.bf16.vlgmr.msra.gmra.mxu0 %vm133_vm1, %v194_v40 }
 0x262   :  { %v361_v41 = vpop.f32.mrf.mxu0 }
 0x263   :  { %v267_v45 = vadd.f32 %v361_v41, %v306_v42 }
 0x264   :  { %v258_v43 = vpop.f32.mrf.mxu0 }
 0x265   :  { %v259_v48 = vadd.f32 %v306_v42, %v258_v43 }
 0x266   :  { %v362_v44 = vpop.f32.mrf.mxu0 }
 0x267   :  { %v270_v46 = vadd.f32 %v362_v44, %v306_v42 }
 0x268   :  { %v261_v47 = vpop.f32.mrf.mxu0 }
 0x269   :  { %v327_v49 = vpack.c.bf16 %v270_v46, %v267_v45  ;;  %v262_v50 = vadd.f32 %v306_v42, %v261_v47 }
 0x26b   :  { %329 = vst [vmem:[%s461_s7 + $0x8] sm:$0xff] %v327_v49   ;;  %v322_v51 = vpack.c.bf16 %v262_v50, %v259_v48 }
 0x26d   :  { %323 = vst [vmem:[%s461_s7] sm:$0xff] %v322_v51  }

</bundles_post_ra>
